<compile_context>
chip_gen: v7x
topology: tpu7x:2x2x1
jax: 0.10.0
libtpu: 0.0.40
codegen_flags: <defaults>
</compile_context>

<pallas_src>
import math

import jax
import jax.numpy as jnp
from jax.experimental import pallas as pl
from jax.experimental.pallas import tpu as pltpu

_LANE = 128


def _copy_kernel(x_ref, o_ref):
    # Pure identity copy of one lane-dense tile (VMEM -> VMEM; DMA handled by
    # the BlockSpec pipeline).
    o_ref[...] = x_ref[...]


def _largest_divisor_multiple(n, align, cap):
    """Largest d with d % align == 0, n % d == 0 and d <= min(cap, n); else None."""
    best = None
    cap = min(cap, n)
    d = align
    while d <= cap:
        if n % d == 0:
            best = d
        d += align
    return best


def _default_tile_bytes():
    """Generation-aware tile-byte target (4x double-buffered footprint must fit VMEM)."""
    try:
        vmem = pltpu.get_tpu_info().vmem_capacity_bytes
        # Keep in+out, double-buffered (4x tile) within ~half of physical VMEM:
        # v7x (64 MiB) -> 8 MiB tiles, v5e/v6e (128 MiB) -> 8 MiB tiles.
        return int(min(8 << 20, max(2 << 20, vmem // 8)))
    except Exception:
        # Conservative default that is safe on all generations.
        return 4 << 20


def flatten(x, *, materialize=True, donate_input=False, tile_bytes=None):
    """Pallas equivalent of torch Flatten: (N, d1, d2, ...) -> (N, d1*d2*...).

    materialize=False : return the free metadata reshape (no kernel, no HBM
                        traffic) — use this whenever Flatten is not a fusion
                        point; it matches torch .view(N, -1) exactly.
    donate_input=True : alias the output onto the (donated) input HBM buffer
                        via input_output_aliases={0: 0}.
    """
    n = x.shape[0] if x.ndim >= 1 else 1
    flat = math.prod(x.shape[1:]) if x.ndim > 1 else 1
    out_shape = (n, flat)

    if not materialize:
        return x.reshape(out_shape)

    itemsize = jnp.dtype(x.dtype).itemsize
    if tile_bytes is None:
        tile_bytes = _default_tile_bytes()
    total = n * flat
    sub_align = max(8, 32 // itemsize)  # f32: 8, bf16: 16, int8/fp8: 32

    # ---- choose a lane-dense slab layout (rows, lanes) for the copy ---------
    if total % _LANE == 0:
        # Lane width: large multiple of 128 dividing `total`, capped so a
        # sublane-aligned row group still fits in one tile.
        lane_cap = max(_LANE, tile_bytes // (sub_align * itemsize))
        lanes = _largest_divisor_multiple(total, _LANE, lane_cap) or _LANE
        rows = total // lanes
    else:
        # Degenerate shape (total not 128-divisible): keep the natural 2D
        # shape.  Stores may be masked (slower) but correctness is unaffected.
        lanes = flat
        rows = n

    # Row tile: sublane-aligned if possible; always byte-capped so the
    # double-buffered in+out footprint stays inside VMEM on every generation.
    row_cap = max(1, tile_bytes // max(1, lanes * itemsize))
    tb = (_largest_divisor_multiple(rows, sub_align, row_cap)
          or _largest_divisor_multiple(rows, 1, row_cap)
          or rows)
    grid = (rows // tb,)

    block_bytes = tb * lanes * itemsize
    # 2 buffers (in + out) x 2 (double-buffered) x block, plus slack; capped at
    # 48 MiB so it stays below v7x's 64 MiB physical VMEM.
    vmem_limit = int(min(48 << 20, max(16 << 20, 4 * block_bytes + (2 << 20))))

    slab = x.reshape(rows, lanes)  # metadata-only on a contiguous array

    out = pl.pallas_call(
        _copy_kernel,
        out_shape=jax.ShapeDtypeStruct((rows, lanes), x.dtype),
        grid_spec=pltpu.PrefetchScalarGridSpec(
            num_scalar_prefetch=0,
            grid=grid,
            in_specs=[pl.BlockSpec((tb, lanes), lambda i: (i, 0))],
            out_specs=pl.BlockSpec((tb, lanes), lambda i: (i, 0)),
        ),
        compiler_params=pltpu.CompilerParams(
            dimension_semantics=("parallel",),
            vmem_limit_bytes=vmem_limit,
        ),
        cost_estimate=pl.CostEstimate(
            flops=0, transcendentals=0, bytes_accessed=2 * total * itemsize),
        input_output_aliases=({0: 0} if donate_input else {}),
    )(slab)

    return out.reshape(out_shape)


if __name__ == "__main__":
    key = jax.random.PRNGKey(0)
    # Small NCHW input consistent with a conv backbone feature map.
    x = jax.random.normal(key, (2, 4, 16, 16), dtype=jnp.float32)

    # Reference: plain JAX reshape (same semantics as torch .view(N, -1)).
    ref = x.reshape(x.shape[0], -1)

    # Pallas copy kernel path (lane-dense slab).
    out = flatten(x)
    out = jax.block_until_ready(out)
    assert out.shape == (2, 4 * 16 * 16)
    assert out.dtype == x.dtype
    assert jnp.array_equal(out, ref)

    # Zero-copy path (recommended whenever Flatten is not a fusion point).
    out_view = jax.block_until_ready(flatten(x, materialize=False))
    assert out_view.shape == ref.shape
    assert jnp.array_equal(out_view, ref)

    print("KERNEL_OK")
</pallas_src>

<mosaic_0001>
module attributes {stable_mosaic.version = 11 : i64} {
  func.func @_copy_kernel(%arg0: i32, %arg1: memref<1x2048xf32, #tpu.memory_space<vmem>>, %arg2: memref<1x2048xf32, #tpu.memory_space<vmem>>) attributes {dimension_semantics = [#tpu.dimension_semantics<parallel>], iteration_bounds = array<i64: 1>, scalar_prefetch = 0 : i64, scratch_operands = 0 : i64, tpu.core_type = #tpu.core_type<tc>, window_params = [{transform_indices = @transform_0, window_bounds = array<i64: 1, 2048>}, {transform_indices = @transform_1, window_bounds = array<i64: 1, 2048>}]} {
    %c0 = arith.constant 0 : index
    %c0_0 = arith.constant 0 : index
    %0 = vector.load %arg1[%c0, %c0_0] : memref<1x2048xf32, #tpu.memory_space<vmem>>, vector<1x2048xf32>
    %c0_1 = arith.constant 0 : index
    %c0_2 = arith.constant 0 : index
    %1 = vector.load %arg2[%c0_1, %c0_2] : memref<1x2048xf32, #tpu.memory_space<vmem>>, vector<1x2048xf32>
    tpu.vector_store %arg2[%c0_1, %c0_2], %0 {strides = array<i32>} : memref<1x2048xf32, #tpu.memory_space<vmem>>, vector<1x2048xf32>,
    return
  }
  func.func @transform_0(%arg0: i32) -> (i32, i32) {
    %c0_i32 = arith.constant 0 : i32
    %c0_i32_0 = arith.constant 0 : i32
    return %arg0, %c0_i32 : i32, i32
  }
  func.func @transform_1(%arg0: i32) -> (i32, i32) {
    %c0_i32 = arith.constant 0 : i32
    %c0_i32_0 = arith.constant 0 : i32
    return %arg0, %c0_i32 : i32, i32
  }
}

</mosaic_0001>

<bundles_post_ra>
// kernel: tpu_custom_call.1
= control target key start
LH: loop header
LB: loop body
LE: loop exit
PB: predicated region body
PF: predicated region fallthrough
CT: control target
= control target key end

     0   :  { %6 = vsyncpa [#allocation3], 0  ;;  %s126_s0 = inlined_call_operand.hbm [shape: f32[1,2048], index: 0, kind: input, shape index: {}]   ;;  %s127_s1 = inlined_call_operand.hbm [shape: f32[1,2048], index: 1, kind: output, shape index: {}]  }
   0x1   :  { %7 = vsyncpa [#allocation4], 0  ;;  %s90_s6 = smov [#allocation2]   ;;  %s42_s10 = scalar_lea.hbm %s126_s0, 256 }
   0x2   :  { %s14_s7 = sshll.u32 %s90_s6, 4  ;;  %p43_p0 = scmp.ne.s32.totalorder %s126_s0, %s42_s10  ;;  %s15_s7 = int_to_ptr.vmem [resolvable:$true] %s14_s7 }
   0x3   :  { %p46_p1 = scmp.lt.u32.totalorder %s42_s10, %s126_s0 }
   0x5   :  { %p48_p2 = pnand %p46_p1, %p43_p0 }
   0x7   :  { %51 = shalt.err (!%p48_p2)
}
   0x8   :  { %s52_s15 = scalar_lea.vmem %s15_s7, 256  ;;  %p57_p4 = scmp.lt.s32.totalorder %s15_s7, %s15_s7 }
   0x9   :  { %p53_p3 = scmp.ne.s32.totalorder %s15_s7, %s52_s15  ;;  %p58_p5 = scmp.lt.s32.totalorder %s52_s15, %s52_s15 }
   0xb   :  { %p59_p6 = por %p58_p5, %p57_p4 }
   0xd   :  { %p60_p7 = pnand %p59_p6, %p53_p3 }
   0xf   :  { %63 = shalt.err (!%p60_p7)
}
  0x10   :  { %17 = dma.hbm_to_vmem [thread:$0]  %s126_s0, 256, %s15_s7, [#allocation3]  }
  0x11   :  { %86 = dma.done.wait [#allocation3], 256  }
  0x12   :  { %87 = vsyncadd [#allocation3], 4294967040  ;;  %s91_s18 = smov [#allocation5]   ;;  %v21_v0 = vld [vmem:[#allocation2] sm:$0xff]  ;;  %v22_v1 = vld [vmem:[#allocation2 + $0x8] sm:$0xff] }
  0x13   :  { %s31_s19 = sshll.u32 %s91_s18, 4  ;;  %23 = vst [vmem:[#allocation5] sm:$0xff] %v21_v0  ;;  %24 = vst [vmem:[#allocation5 + $0x8] sm:$0xff] %v22_v1  ;;  %s32_s19 = int_to_ptr.vmem [resolvable:$true] %s31_s19 }
  0x14   :  { %s64_s20 = scalar_lea.vmem %s32_s19, 256  ;;  %p69_p9 = scmp.lt.s32.totalorder %s32_s19, %s32_s19 }
  0x15   :  { %p65_p8 = scmp.ne.s32.totalorder %s32_s19, %s64_s20  ;;  %p70_p10 = scmp.lt.s32.totalorder %s64_s20, %s64_s20 }
  0x17   :  { %p71_p11 = por %p70_p10, %p69_p9 }
  0x19   :  { %p72_p12 = pnand %p71_p11, %p65_p8 }
  0x1b   :  { %75 = shalt.err (!%p72_p12)
}
  0x1c   :  { %s76_s0 = scalar_lea.hbm %s127_s1, 256 }
  0x1d   :  { %p77_p13 = scmp.ne.s32.totalorder %s127_s1, %s76_s0  ;;  %p80_p0 = scmp.lt.u32.totalorder %s76_s0, %s127_s1 }
  0x1f   :  { %p82_p1 = pnand %p80_p0, %p77_p13 }
  0x21   :  { %85 = shalt.err (!%p82_p1)
}
  0x22   :  { %34 = dma.vmem_to_hbm [thread:$0]  %s32_s19, 256, %s127_s1, [#allocation4]  }
  0x23   :  { %88 = dma.done.wait [#allocation4], 256  }
  0x24   :  { %89 = vsyncadd [#allocation4], 4294967040 }
  0x25   :  { %38 = vsyncpa [#allocation3], 1 }
  0x26   :  { %39 = vsyncpa [#allocation4], 1 }

</bundles_post_ra>
